<compile_context>
chip_gen: v7x
topology: tpu7x:2x2x1
jax: 0.10.0
libtpu: 0.0.40
codegen_flags: <defaults>
</compile_context>

<pallas_src>
import math

import jax
import jax.numpy as jnp
import numpy as np
from jax import lax
from jax.experimental import pallas as pl
from jax.experimental.pallas import tpu as pltpu

LN_EPS = 1e-5  # torch.nn.LayerNorm default eps

# Compat shim: the class was renamed TPUCompilerParams -> CompilerParams.
_CompilerParams = getattr(pltpu, "CompilerParams", None) or getattr(
    pltpu, "TPUCompilerParams")

# Operand order of the prepared (re-laid-out) parameters.
_PP_KEYS = (
    # enc.featproj (shared per-step weights) + packed [b1|b2+b3|gamma|beta]
    "efp_w1", "efp_w2", "efp_w3", "efp_vec",
    # enc.enc1, input split as [cov_flat | yprv]
    "e1_w1a", "e1_w1b", "e1_w2", "e1_w3a", "e1_w3b", "e1_vec",
    # enc.enc2[*] + dec.dec1[*] stacked on a leading layer axis
    "mid_w1", "mid_w2", "mid_w3", "mid_vec",
    # dec.dec2
    "d2_w1", "d2_w2", "d2_w3", "d2_vec",
    # dec.featproj (shared per-step weights)
    "dfp_w1", "dfp_w2", "dfp_w3", "dfp_vec",
    # final residual linear; temporal beta is pre-folded into out_b
    "out_w", "out_b",
)


# ---------------------------------------------------------------------------
# Fused kernel
# ---------------------------------------------------------------------------
def _make_kernel(*, T, nprd, idim, cov, hdim, d2_odim, n_mid):
    n_const = len(_PP_KEYS)

    def kernel(x_ref, yprv_ref, *refs):
        pp = dict(zip(_PP_KEYS, refs[:n_const]))
        o_ref = refs[n_const]

        def mm(a, b):
            # MXU matmul: bf16 operands, f32 accumulate.
            return jnp.dot(a.astype(jnp.bfloat16), b,
                           preferred_element_type=jnp.float32)

        def layernorm(y, gamma, beta):
            # Two-pass LayerNorm in f32 (robust against cancellation).
            mean = jnp.mean(y, axis=-1, keepdims=True)
            c = y - mean
            var = jnp.mean(c * c, axis=-1, keepdims=True)
            return c * lax.rsqrt(var + LN_EPS) * gamma + beta

        def unpack(vec, hd, od):
            # Packed per-block constants: [b1 | b2+b3 | gamma | beta].
            return (vec[:, :hd],
                    vec[:, hd:hd + od],
                    vec[:, hd + od:hd + 2 * od],
                    vec[:, hd + 2 * od:hd + 3 * od])

        def res(xin, w1, w2, w3, vec, hd, od):
            b1, b23, gamma, beta = unpack(vec, hd, od)
            h = jnp.maximum(mm(xin, w1) + b1, 0.0)
            y = mm(h, w2) + mm(xin, w3) + b23      # b2 + b3 folded into b23
            return layernorm(y, gamma, beta)

        x2 = x_ref[...]          # (bt, T*idim) f32
        yprv = yprv_ref[...]     # (bt, nseq)   f32

        # ---- enc.featproj: shared (idim->cov) Res applied per time step;
        # lane slices + one lane-concat replace the old kron/block-diagonal
        # weights and the MXU averaging matrix.
        efp_w1 = pp["efp_w1"][...]
        efp_w2 = pp["efp_w2"][...]
        efp_w3 = pp["efp_w3"][...]
        efp_vec = pp["efp_vec"][...]
        covf = jnp.concatenate(
            [res(x2[:, t * idim:(t + 1) * idim],
                 efp_w1, efp_w2, efp_w3, efp_vec, cov, cov)
             for t in range(T)], axis=-1)                       # (bt, T*cov)

        # ---- enc.enc1 on concat([covariate_flatten, yprv]) via split weights
        e1_b1, e1_b23, e1_g, e1_b = unpack(pp["e1_vec"][...], hdim, hdim)
        h1 = jnp.maximum(mm(covf, pp["e1_w1a"][...])
                         + mm(yprv, pp["e1_w1b"][...]) + e1_b1, 0.0)
        y1 = (mm(h1, pp["e1_w2"][...]) + mm(covf, pp["e1_w3a"][...])
              + mm(yprv, pp["e1_w3b"][...]) + e1_b23)
        hh = layernorm(y1, e1_g, e1_b)                          # (bt, hdim)

        # ---- enc.enc2[*] then dec.dec1[*] (stacked hdim->hdim layers).
        # Static unroll for shallow stacks; fori_loop bounds live ranges for
        # deep ones.  (Weight streaming for very large hdim on v7x would be
        # layered on top of this loop; not needed at these sizes.)
        def mid_layer(l, h):
            return res(h, pp["mid_w1"][l], pp["mid_w2"][l], pp["mid_w3"][l],
                       pp["mid_vec"][l], hdim, hdim)

        if n_mid <= 4:
            for l in range(n_mid):
                hh = mid_layer(l, hh)
        else:
            hh = lax.fori_loop(0, n_mid, mid_layer, hh)

        # ---- dec.dec2 (LayerNorm over the full nprd*odim output)
        gdec = res(hh, pp["d2_w1"][...], pp["d2_w2"][...], pp["d2_w3"][...],
                   pp["d2_vec"][...], hdim, d2_odim)            # (bt, nprd*odim)

        # ---- dec.featproj on x[:, -nprd:, :], sliced in-kernel from x2
        # (no separate x_dec operand), shared weights per prediction step.
        dfp_w1 = pp["dfp_w1"][...]
        dfp_w2 = pp["dfp_w2"][...]
        dfp_w3 = pp["dfp_w3"][...]
        dfp_vec = pp["dfp_vec"][...]
        covd = jnp.concatenate(
            [res(x2[:, (T - nprd + j) * idim:(T - nprd + j + 1) * idim],
                 dfp_w1, dfp_w2, dfp_w3, dfp_vec, cov, cov)
             for j in range(nprd)], axis=-1)                    # (bt, nprd*cov)

        # ---- dec.temporal: Res(odim+cov, hdim, 1).  LayerNorm over a single
        # element is exactly `beta` for any input, so (per the perf review)
        # its matmuls are elided and beta is folded into out_b below.  gdec /
        # covd only feed that block; they are kept above to mirror the module
        # structure and the compiler is free to DCE them.
        del gdec, covd

        # ---- final residual: p = temporal_beta + yprv @ res_w + res_b.
        # Kept in f32: it is the only matmul on the output path and is tiny.
        o_ref[...] = (jnp.dot(yprv, pp["out_w"][...],
                              preferred_element_type=jnp.float32)
                      + pp["out_b"][...])

    return kernel


def _round_up(n, m):
    return (n + m - 1) // m * m


def tsde_forward(prepared, x, yprv, *, nprd):
    """Fused TSDE forward: one pallas_call gridded over batch tiles."""
    B, T, idim = x.shape
    nseq = yprv.shape[1]
    cov = prepared["efp_w2"].shape[0]
    hdim = prepared["e1_w2"].shape[0]
    n_mid = prepared["mid_w1"].shape[0]
    d2_odim = prepared["d2_w2"].shape[1]

    # Batch tile: fill MXU rows when the batch is large enough, otherwise the
    # smallest sublane-aligned tile covering the batch.
    if B >= 256:
        bt = 256
    elif B >= 128:
        bt = 128
    else:
        bt = _round_up(B, 8)
    b_pad = _round_up(B, bt)

    x2 = x.reshape(B, T * idim).astype(jnp.float32)   # free wrapper reshape
    yprv = yprv.astype(jnp.float32)
    if b_pad != B:
        x2 = jnp.pad(x2, ((0, b_pad - B), (0, 0)))
        yprv = jnp.pad(yprv, ((0, b_pad - B), (0, 0)))

    const_args = [prepared[k] for k in _PP_KEYS]

    def const_spec(a):
        nd = a.ndim
        return pl.BlockSpec(a.shape, lambda b, _n=nd: (0,) * _n)

    in_specs = ([pl.BlockSpec((bt, T * idim), lambda b: (b, 0)),
                 pl.BlockSpec((bt, nseq), lambda b: (b, 0))]
                + [const_spec(a) for a in const_args])
    out_spec = pl.BlockSpec((bt, nprd), lambda b: (b, 0))

    # Explicit VMEM budget: resident weights + double-buffered batched blocks
    # + activation slabs, clamped below v7x's 64 MiB physical ceiling.
    weight_bytes = sum(int(a.size) * a.dtype.itemsize for a in const_args)
    block_bytes = 4 * bt * (T * idim + nseq + nprd)
    act_bytes = 4 * bt * (T * cov + 6 * hdim + d2_odim + nprd * cov)
    vmem_limit = int(min(max(weight_bytes + 2 * block_bytes + 2 * act_bytes
                             + (8 << 20), 32 << 20), 56 << 20))

    kernel = _make_kernel(T=T, nprd=nprd, idim=idim, cov=cov, hdim=hdim,
                          d2_odim=d2_odim, n_mid=n_mid)
    out = pl.pallas_call(
        kernel,
        out_shape=jax.ShapeDtypeStruct((b_pad, nprd), jnp.float32),
        grid=(b_pad // bt,),
        in_specs=in_specs,
        out_specs=out_spec,
        compiler_params=_CompilerParams(
            dimension_semantics=("parallel",),
            vmem_limit_bytes=vmem_limit),
    )(x2, yprv, *const_args)
    return out[:B]


# ---------------------------------------------------------------------------
# Weight re-layout for the fused kernel (runs once, plain JAX)
# ---------------------------------------------------------------------------
def prepare_params(params, *, T, nprd):
    fp, dfp = params["enc_featproj"], params["dec_featproj"]
    e1, d2, tp = params["enc1"], params["dec2"], params["temporal"]
    cov = fp["w2"].shape[0]          # covariatedim (featproj hidden == out)
    split = T * cov                  # [cov_flat | yprv] boundary in enc1

    f16 = lambda w: w.astype(jnp.bfloat16)

    def packed_vec(blk):
        # [b1 | b2 + b3 | gamma | beta] — one lane-packed f32 vector per block
        return jnp.concatenate(
            [blk["b1"], blk["b2"] + blk["b3"], blk["gamma"], blk["beta"]],
            axis=1).astype(jnp.float32)

    pp = {}
    for name, blk in (("efp", fp), ("dfp", dfp)):
        pp[name + "_w1"] = f16(blk["w1"])
        pp[name + "_w2"] = f16(blk["w2"])
        pp[name + "_w3"] = f16(blk["w3"])
        pp[name + "_vec"] = packed_vec(blk)

    # enc1: split weights so concat([cov_flat, yprv]) is never materialized
    pp["e1_w1a"], pp["e1_w1b"] = f16(e1["w1"][:split]), f16(e1["w1"][split:])
    pp["e1_w3a"], pp["e1_w3b"] = f16(e1["w3"][:split]), f16(e1["w3"][split:])
    pp["e1_w2"], pp["e1_vec"] = f16(e1["w2"]), packed_vec(e1)

    # enc2[*] + dec1[*] stacked on a leading layer axis
    mids = list(params["enc2"]) + list(params["dec1"])
    assert mids, "nlay must be >= 2 (enc2/dec1 stacks empty otherwise)"
    pp["mid_w1"] = jnp.stack([f16(m["w1"]) for m in mids], axis=0)
    pp["mid_w2"] = jnp.stack([f16(m["w2"]) for m in mids], axis=0)
    pp["mid_w3"] = jnp.stack([f16(m["w3"]) for m in mids], axis=0)
    pp["mid_vec"] = jnp.stack([packed_vec(m) for m in mids], axis=0)

    pp["d2_w1"], pp["d2_w2"], pp["d2_w3"] = (f16(d2["w1"]), f16(d2["w2"]),
                                             f16(d2["w3"]))
    pp["d2_vec"] = packed_vec(d2)

    # dec.temporal: LayerNorm over one element -> output is exactly beta;
    # fold it into the final residual bias, keep the tiny output-path matmul
    # weight in f32 for exact parity with the f32 reference.
    pp["out_w"] = params["res_w"].astype(jnp.float32)
    pp["out_b"] = (params["res_b"] + tp["beta"]).astype(jnp.float32)
    return pp


# ---------------------------------------------------------------------------
# Parameter construction (deterministic, PyTorch-style uniform init)
# ---------------------------------------------------------------------------
def _init_linear(key, fan_in, fan_out):
    kw, kb = jax.random.split(key)
    bound = 1.0 / math.sqrt(fan_in)
    w = jax.random.uniform(kw, (fan_in, fan_out), jnp.float32, -bound, bound)
    b = jax.random.uniform(kb, (1, fan_out), jnp.float32, -bound, bound)
    return w, b


def init_res(key, idim, hdim, odim):
    k1, k2, k3 = jax.random.split(key, 3)
    w1, b1 = _init_linear(k1, idim, hdim)
    w2, b2 = _init_linear(k2, hdim, odim)
    w3, b3 = _init_linear(k3, idim, odim)
    return dict(w1=w1, b1=b1, w2=w2, b2=b2, w3=w3, b3=b3,
                gamma=jnp.ones((1, odim), jnp.float32),
                beta=jnp.zeros((1, odim), jnp.float32))


def init_tsde(key, idim, covariatedim, hdim, odim, nlay, nprd, nseq):
    keys = jax.random.split(key, 8 + 2 * (nlay - 1))
    ki = iter(keys)
    params = {}
    params["enc_featproj"] = init_res(next(ki), idim, covariatedim, covariatedim)
    params["enc1"] = init_res(next(ki), (nseq + nprd) * covariatedim + nseq, hdim, hdim)
    params["enc2"] = [init_res(next(ki), hdim, hdim, hdim) for _ in range(nlay - 1)]
    params["dec1"] = [init_res(next(ki), hdim, hdim, hdim) for _ in range(nlay - 1)]
    params["dec2"] = init_res(next(ki), hdim, hdim, nprd * odim)
    params["dec_featproj"] = init_res(next(ki), idim, covariatedim, covariatedim)
    params["temporal"] = init_res(next(ki), odim + covariatedim, hdim, 1)
    rw, rb = _init_linear(next(ki), nseq, nprd)
    params["res_w"], params["res_b"] = rw, rb
    return params


# ---------------------------------------------------------------------------
# Pure-JAX reference (operates on the raw, unprepared params)
# ---------------------------------------------------------------------------
def res_ref(x, p):
    h = jnp.maximum(x @ p["w1"] + p["b1"], 0.0) @ p["w2"] + p["b2"]
    r = x @ p["w3"] + p["b3"]
    y = h + r
    mean = jnp.mean(y, axis=-1, keepdims=True)
    var = jnp.mean((y - mean) ** 2, axis=-1, keepdims=True)
    return (y - mean) / jnp.sqrt(var + LN_EPS) * p["gamma"] + p["beta"]


def tsde_ref(params, x, yprv, *, nprd, odim, covariatedim):
    B, T, idim = x.shape
    cov = res_ref(x, params["enc_featproj"]).reshape(B, T * covariatedim)
    h = jnp.concatenate([cov, yprv], axis=1)
    h = res_ref(h, params["enc1"])
    for p in params["enc2"]:
        h = res_ref(h, p)
    for p in params["dec1"]:
        h = res_ref(h, p)
    g = res_ref(h, params["dec2"]).reshape(B, nprd, odim)
    cov_prd = res_ref(x[:, -nprd:, :], params["dec_featproj"])
    o = res_ref(jnp.concatenate([g, cov_prd], axis=-1), params["temporal"])[..., 0]
    return o + yprv @ params["res_w"] + params["res_b"]


# ---------------------------------------------------------------------------
if __name__ == "__main__":
    # Small hyperparameters consistent with the module's forward.
    idim, covariatedim, hdim, odim = 4, 8, 32, 4
    drop, nlay, nprd, nseq = 0.1, 2, 4, 8
    B = 2
    T = nseq + nprd

    key = jax.random.PRNGKey(0)
    kp, kx, ky = jax.random.split(key, 3)
    params = init_tsde(kp, idim, covariatedim, hdim, odim, nlay, nprd, nseq)
    prepared = prepare_params(params, T=T, nprd=nprd)

    x = jax.random.normal(kx, (B, T, idim), jnp.float32)        # (2, 12, 4)
    yprv = jax.random.normal(ky, (B, nseq), jnp.float32)        # (2, 8)

    fwd = jax.jit(lambda pp, xx, yy: tsde_forward(pp, xx, yy, nprd=nprd))
    out = jax.block_until_ready(fwd(prepared, x, yprv))

    ref = tsde_ref(params, x, yprv,
                   nprd=nprd, odim=odim, covariatedim=covariatedim)
    np.testing.assert_allclose(np.asarray(out), np.asarray(ref),
                               rtol=1e-4, atol=1e-4)

    assert out.shape == (B, nprd)
    print("KERNEL_OK")
</pallas_src>

<mosaic_0001>
module attributes {stable_mosaic.version = 11 : i64} {
  func.func @kernel(%arg0: i32, %arg1: memref<8x48xf32, #tpu.memory_space<vmem>>, %arg2: memref<8x8xf32, #tpu.memory_space<vmem>>, %arg3: memref<4x8xbf16, #tpu.memory_space<vmem>>, %arg4: memref<8x8xbf16, #tpu.memory_space<vmem>>, %arg5: memref<4x8xbf16, #tpu.memory_space<vmem>>, %arg6: memref<1x32xf32, #tpu.memory_space<vmem>>, %arg7: memref<96x32xbf16, #tpu.memory_space<vmem>>, %arg8: memref<8x32xbf16, #tpu.memory_space<vmem>>, %arg9: memref<32x32xbf16, #tpu.memory_space<vmem>>, %arg10: memref<96x32xbf16, #tpu.memory_space<vmem>>, %arg11: memref<8x32xbf16, #tpu.memory_space<vmem>>, %arg12: memref<1x128xf32, #tpu.memory_space<vmem>>, %arg13: memref<2x32x32xbf16, #tpu.memory_space<vmem>>, %arg14: memref<2x32x32xbf16, #tpu.memory_space<vmem>>, %arg15: memref<2x32x32xbf16, #tpu.memory_space<vmem>>, %arg16: memref<2x1x128xf32, #tpu.memory_space<vmem>>, %arg17: memref<32x32xbf16, #tpu.memory_space<vmem>>, %arg18: memref<32x16xbf16, #tpu.memory_space<vmem>>, %arg19: memref<32x16xbf16, #tpu.memory_space<vmem>>, %arg20: memref<1x80xf32, #tpu.memory_space<vmem>>, %arg21: memref<4x8xbf16, #tpu.memory_space<vmem>>, %arg22: memref<8x8xbf16, #tpu.memory_space<vmem>>, %arg23: memref<4x8xbf16, #tpu.memory_space<vmem>>, %arg24: memref<1x32xf32, #tpu.memory_space<vmem>>, %arg25: memref<8x4xf32, #tpu.memory_space<vmem>>, %arg26: memref<1x4xf32, #tpu.memory_space<vmem>>, %arg27: memref<8x4xf32, #tpu.memory_space<vmem>>) attributes {dimension_semantics = [#tpu.dimension_semantics<parallel>], iteration_bounds = array<i64: 1>, scalar_prefetch = 0 : i64, scratch_operands = 0 : i64, tpu.core_type = #tpu.core_type<tc>, window_params = [{transform_indices = @transform_0, window_bounds = array<i64: 8, 48>}, {transform_indices = @transform_1, window_bounds = array<i64: 8, 8>}, {pipeline_mode = #tpu.pipeline_mode<synchronous>, transform_indices = @transform_2, window_bounds = array<i64: 4, 8>}, {pipeline_mode = #tpu.pipeline_mode<synchronous>, transform_indices = @transform_3, window_bounds = array<i64: 8, 8>}, {pipeline_mode = #tpu.pipeline_mode<synchronous>, transform_indices = @transform_4, window_bounds = array<i64: 4, 8>}, {pipeline_mode = #tpu.pipeline_mode<synchronous>, transform_indices = @transform_5, window_bounds = array<i64: 1, 32>}, {pipeline_mode = #tpu.pipeline_mode<synchronous>, transform_indices = @transform_6, window_bounds = array<i64: 96, 32>}, {pipeline_mode = #tpu.pipeline_mode<synchronous>, transform_indices = @transform_7, window_bounds = array<i64: 8, 32>}, {pipeline_mode = #tpu.pipeline_mode<synchronous>, transform_indices = @transform_8, window_bounds = array<i64: 32, 32>}, {pipeline_mode = #tpu.pipeline_mode<synchronous>, transform_indices = @transform_9, window_bounds = array<i64: 96, 32>}, {pipeline_mode = #tpu.pipeline_mode<synchronous>, transform_indices = @transform_10, window_bounds = array<i64: 8, 32>}, {pipeline_mode = #tpu.pipeline_mode<synchronous>, transform_indices = @transform_11, window_bounds = array<i64: 1, 128>}, {pipeline_mode = #tpu.pipeline_mode<synchronous>, transform_indices = @transform_12, window_bounds = array<i64: 2, 32, 32>}, {pipeline_mode = #tpu.pipeline_mode<synchronous>, transform_indices = @transform_13, window_bounds = array<i64: 2, 32, 32>}, {pipeline_mode = #tpu.pipeline_mode<synchronous>, transform_indices = @transform_14, window_bounds = array<i64: 2, 32, 32>}, {pipeline_mode = #tpu.pipeline_mode<synchronous>, transform_indices = @transform_15, window_bounds = array<i64: 2, 1, 128>}, {pipeline_mode = #tpu.pipeline_mode<synchronous>, transform_indices = @transform_16, window_bounds = array<i64: 32, 32>}, {pipeline_mode = #tpu.pipeline_mode<synchronous>, transform_indices = @transform_17, window_bounds = array<i64: 32, 16>}, {pipeline_mode = #tpu.pipeline_mode<synchronous>, transform_indices = @transform_18, window_bounds = array<i64: 32, 16>}, {pipeline_mode = #tpu.pipeline_mode<synchronous>, transform_indices = @transform_19, window_bounds = array<i64: 1, 80>}, {pipeline_mode = #tpu.pipeline_mode<synchronous>, transform_indices = @transform_20, window_bounds = array<i64: 4, 8>}, {pipeline_mode = #tpu.pipeline_mode<synchronous>, transform_indices = @transform_21, window_bounds = array<i64: 8, 8>}, {pipeline_mode = #tpu.pipeline_mode<synchronous>, transform_indices = @transform_22, window_bounds = array<i64: 4, 8>}, {pipeline_mode = #tpu.pipeline_mode<synchronous>, transform_indices = @transform_23, window_bounds = array<i64: 1, 32>}, {pipeline_mode = #tpu.pipeline_mode<synchronous>, transform_indices = @transform_24, window_bounds = array<i64: 8, 4>}, {pipeline_mode = #tpu.pipeline_mode<synchronous>, transform_indices = @transform_25, window_bounds = array<i64: 1, 4>}, {transform_indices = @transform_26, window_bounds = array<i64: 8, 4>}]} {
    %c0 = arith.constant 0 : index
    %c0_0 = arith.constant 0 : index
    %0 = vector.load %arg2[%c0, %c0_0] : memref<8x8xf32, #tpu.memory_space<vmem>>, vector<8x8xf32>
    %c0_1 = arith.constant 0 : index
    %c0_2 = arith.constant 0 : index
    %1 = vector.load %arg25[%c0_1, %c0_2] : memref<8x4xf32, #tpu.memory_space<vmem>>, vector<8x4xf32>
    %cst = arith.constant dense<0.000000e+00> : vector<8x4xf32>
    %2 = tpu.matmul %0, %1, %cst {dimension_numbers = #tpu.dot_dimension_numbers<[1], [0], [0], [1], [0, 0, 1, 1], [], []>} : vector<8x8xf32>, vector<8x4xf32>, vector<8x4xf32> -> vector<8x4xf32>
    %c0_3 = arith.constant 0 : index
    %c0_4 = arith.constant 0 : index
    %3 = vector.load %arg26[%c0_3, %c0_4] : memref<1x4xf32, #tpu.memory_space<vmem>>, vector<1x4xf32>
    %4 = vector.broadcast %3 : vector<1x4xf32> to vector<8x4xf32>
    %5 = arith.addf %2, %4 : vector<8x4xf32>
    %c0_5 = arith.constant 0 : index
    %c0_6 = arith.constant 0 : index
    %6 = vector.load %arg27[%c0_5, %c0_6] : memref<8x4xf32, #tpu.memory_space<vmem>>, vector<8x4xf32>
    tpu.vector_store %arg27[%c0_5, %c0_6], %5 {strides = array<i32>} : memref<8x4xf32, #tpu.memory_space<vmem>>, vector<8x4xf32>,
    return
  }
  func.func @transform_0(%arg0: i32) -> (i32, i32) {
    %c0_i32 = arith.constant 0 : i32
    %c0_i32_0 = arith.constant 0 : i32
    return %arg0, %c0_i32 : i32, i32
  }
  func.func @transform_1(%arg0: i32) -> (i32, i32) {
    %c0_i32 = arith.constant 0 : i32
    %c0_i32_0 = arith.constant 0 : i32
    return %arg0, %c0_i32 : i32, i32
  }
  func.func @transform_2(%arg0: i32) -> (i32, i32) {
    %c0_i32 = arith.constant 0 : i32
    %c0_i32_0 = arith.constant 0 : i32
    %c0_i32_1 = arith.constant 0 : i32
    return %c0_i32, %c0_i32_0 : i32, i32
  }
  func.func @transform_3(%arg0: i32) -> (i32, i32) {
    %c0_i32 = arith.constant 0 : i32
    %c0_i32_0 = arith.constant 0 : i32
    %c0_i32_1 = arith.constant 0 : i32
    return %c0_i32, %c0_i32_0 : i32, i32
  }
  func.func @transform_4(%arg0: i32) -> (i32, i32) {
    %c0_i32 = arith.constant 0 : i32
    %c0_i32_0 = arith.constant 0 : i32
    %c0_i32_1 = arith.constant 0 : i32
    return %c0_i32, %c0_i32_0 : i32, i32
  }
  func.func @transform_5(%arg0: i32) -> (i32, i32) {
    %c0_i32 = arith.constant 0 : i32
    %c0_i32_0 = arith.constant 0 : i32
    %c0_i32_1 = arith.constant 0 : i32
    return %c0_i32, %c0_i32_0 : i32, i32
  }
  func.func @transform_6(%arg0: i32) -> (i32, i32) {
    %c0_i32 = arith.constant 0 : i32
    %c0_i32_0 = arith.constant 0 : i32
    %c0_i32_1 = arith.constant 0 : i32
    return %c0_i32, %c0_i32_0 : i32, i32
  }
  func.func @transform_7(%arg0: i32) -> (i32, i32) {
    %c0_i32 = arith.constant 0 : i32
    %c0_i32_0 = arith.constant 0 : i32
    %c0_i32_1 = arith.constant 0 : i32
    return %c0_i32, %c0_i32_0 : i32, i32
  }
  func.func @transform_8(%arg0: i32) -> (i32, i32) {
    %c0_i32 = arith.constant 0 : i32
    %c0_i32_0 = arith.constant 0 : i32
    %c0_i32_1 = arith.constant 0 : i32
    return %c0_i32, %c0_i32_0 : i32, i32
  }
  func.func @transform_9(%arg0: i32) -> (i32, i32) {
    %c0_i32 = arith.constant 0 : i32
    %c0_i32_0 = arith.constant 0 : i32
    %c0_i32_1 = arith.constant 0 : i32
    return %c0_i32, %c0_i32_0 : i32, i32
  }
  func.func @transform_10(%arg0: i32) -> (i32, i32) {
    %c0_i32 = arith.constant 0 : i32
    %c0_i32_0 = arith.constant 0 : i32
    %c0_i32_1 = arith.constant 0 : i32
    return %c0_i32, %c0_i32_0 : i32, i32
  }
  func.func @transform_11(%arg0: i32) -> (i32, i32) {
    %c0_i32 = arith.constant 0 : i32
    %c0_i32_0 = arith.constant 0 : i32
    %c0_i32_1 = arith.constant 0 : i32
    return %c0_i32, %c0_i32_0 : i32, i32
  }
  func.func @transform_12(%arg0: i32) -> (i32, i32, i32) {
    %c0_i32 = arith.constant 0 : i32
    %c0_i32_0 = arith.constant 0 : i32
    %c0_i32_1 = arith.constant 0 : i32
    %c0_i32_2 = arith.constant 0 : i32
    return %c0_i32, %c0_i32_0, %c0_i32_1 : i32, i32, i32
  }
  func.func @transform_13(%arg0: i32) -> (i32, i32, i32) {
    %c0_i32 = arith.constant 0 : i32
    %c0_i32_0 = arith.constant 0 : i32
    %c0_i32_1 = arith.constant 0 : i32
    %c0_i32_2 = arith.constant 0 : i32
    return %c0_i32, %c0_i32_0, %c0_i32_1 : i32, i32, i32
  }
  func.func @transform_14(%arg0: i32) -> (i32, i32, i32) {
    %c0_i32 = arith.constant 0 : i32
    %c0_i32_0 = arith.constant 0 : i32
    %c0_i32_1 = arith.constant 0 : i32
    %c0_i32_2 = arith.constant 0 : i32
    return %c0_i32, %c0_i32_0, %c0_i32_1 : i32, i32, i32
  }
  func.func @transform_15(%arg0: i32) -> (i32, i32, i32) {
    %c0_i32 = arith.constant 0 : i32
    %c0_i32_0 = arith.constant 0 : i32
    %c0_i32_1 = arith.constant 0 : i32
    %c0_i32_2 = arith.constant 0 : i32
    return %c0_i32, %c0_i32_0, %c0_i32_1 : i32, i32, i32
  }
  func.func @transform_16(%arg0: i32) -> (i32, i32) {
    %c0_i32 = arith.constant 0 : i32
    %c0_i32_0 = arith.constant 0 : i32
    %c0_i32_1 = arith.constant 0 : i32
    return %c0_i32, %c0_i32_0 : i32, i32
  }
  func.func @transform_17(%arg0: i32) -> (i32, i32) {
    %c0_i32 = arith.constant 0 : i32
    %c0_i32_0 = arith.constant 0 : i32
    %c0_i32_1 = arith.constant 0 : i32
    return %c0_i32, %c0_i32_0 : i32, i32
  }
  func.func @transform_18(%arg0: i32) -> (i32, i32) {
    %c0_i32 = arith.constant 0 : i32
    %c0_i32_0 = arith.constant 0 : i32
    %c0_i32_1 = arith.constant 0 : i32
    return %c0_i32, %c0_i32_0 : i32, i32
  }
  func.func @transform_19(%arg0: i32) -> (i32, i32) {
    %c0_i32 = arith.constant 0 : i32
    %c0_i32_0 = arith.constant 0 : i32
    %c0_i32_1 = arith.constant 0 : i32
    return %c0_i32, %c0_i32_0 : i32, i32
  }
  func.func @transform_20(%arg0: i32) -> (i32, i32) {
    %c0_i32 = arith.constant 0 : i32
    %c0_i32_0 = arith.constant 0 : i32
    %c0_i32_1 = arith.constant 0 : i32
    return %c0_i32, %c0_i32_0 : i32, i32
  }
  func.func @transform_21(%arg0: i32) -> (i32, i32) {
    %c0_i32 = arith.constant 0 : i32
    %c0_i32_0 = arith.constant 0 : i32
    %c0_i32_1 = arith.constant 0 : i32
    return %c0_i32, %c0_i32_0 : i32, i32
  }
  func.func @transform_22(%arg0: i32) -> (i32, i32) {
    %c0_i32 = arith.constant 0 : i32
    %c0_i32_0 = arith.constant 0 : i32
    %c0_i32_1 = arith.constant 0 : i32
    return %c0_i32, %c0_i32_0 : i32, i32
  }
  func.func @transform_23(%arg0: i32) -> (i32, i32) {
    %c0_i32 = arith.constant 0 : i32
    %c0_i32_0 = arith.constant 0 : i32
    %c0_i32_1 = arith.constant 0 : i32
    return %c0_i32, %c0_i32_0 : i32, i32
  }
  func.func @transform_24(%arg0: i32) -> (i32, i32) {
    %c0_i32 = arith.constant 0 : i32
    %c0_i32_0 = arith.constant 0 : i32
    %c0_i32_1 = arith.constant 0 : i32
    return %c0_i32, %c0_i32_0 : i32, i32
  }
  func.func @transform_25(%arg0: i32) -> (i32, i32) {
    %c0_i32 = arith.constant 0 : i32
    %c0_i32_0 = arith.constant 0 : i32
    %c0_i32_1 = arith.constant 0 : i32
    return %c0_i32, %c0_i32_0 : i32, i32
  }
  func.func @transform_26(%arg0: i32) -> (i32, i32) {
    %c0_i32 = arith.constant 0 : i32
    %c0_i32_0 = arith.constant 0 : i32
    return %arg0, %c0_i32 : i32, i32
  }
}

</mosaic_0001>

<bundles_post_ra>
// kernel: _lambda_.1
= control target key start
LH: loop header
LB: loop body
LE: loop exit
PB: predicated region body
PF: predicated region fallthrough
CT: control target
= control target key end

     0   :  { %vm92_vm0 = vcmask 64512   ;;  %v183_v0 = vmov 0.0   ;;  %vm184_vm1 = vmmov 0   ;;  %vm166_vm2 = vcmask 31744   ;;  %s332_s0 = inlined_call_operand.vmem [shape: f32[8,48], index: 0, kind: input, shape index: {}]   ;;  %s333_s2 = inlined_call_operand.vmem [shape: bf16[4,8], index: 2, kind: input, shape index: {}]   ;;  %s334_s3 = inlined_call_operand.vmem [shape: bf16[8,8], index: 3, kind: input, shape index: {}]   ;;  %s335_s4 = inlined_call_operand.vmem [shape: bf16[4,8], index: 4, kind: input, shape index: {}]   ;;  %s336_s5 = inlined_call_operand.vmem [shape: f32[1,32], index: 5, kind: input, shape index: {}]   ;;  %s337_s6 = inlined_call_operand.vmem [shape: bf16[96,32], index: 6, kind: input, shape index: {}]   ;;  %s338_s7 = inlined_call_operand.vmem [shape: bf16[8,32], index: 7, kind: input, shape index: {}]   ;;  %s339_s8 = inlined_call_operand.vmem [shape: bf16[32,32], index: 8, kind: input, shape index: {}]   ;;  %s340_s9 = inlined_call_operand.vmem [shape: bf16[96,32], index: 9, kind: input, shape index: {}]   ;;  %s341_s10 = inlined_call_operand.vmem [shape: bf16[8,32], index: 10, kind: input, shape index: {}]   ;;  %s342_s11 = inlined_call_operand.vmem [shape: f32[1,128], index: 11, kind: input, shape index: {}]   ;;  %s343_s12 = inlined_call_operand.vmem [shape: bf16[2,32,32], index: 12, kind: input, shape index: {}]   ;;  %s344_s13 = inlined_call_operand.vmem [shape: bf16[2,32,32], index: 13, kind: input, shape index: {}]   ;;  %s345_s14 = inlined_call_operand.vmem [shape: bf16[2,32,32], index: 14, kind: input, shape index: {}]   ;;  %s346_s15 = inlined_call_operand.vmem [shape: f32[2,1,128], index: 15, kind: input, shape index: {}]   ;;  %s347_s16 = inlined_call_operand.vmem [shape: bf16[32,32], index: 16, kind: input, shape index: {}]   ;;  %s348_s17 = inlined_call_operand.vmem [shape: bf16[32,16], index: 17, kind: input, shape index: {}]   ;;  %s349_s18 = inlined_call_operand.vmem [shape: bf16[32,16], index: 18, kind: input, shape index: {}]   ;;  %s350_s19 = inlined_call_operand.vmem [shape: f32[1,80], index: 19, kind: input, shape index: {}]   ;;  %s351_s20 = inlined_call_operand.vmem [shape: bf16[4,8], index: 20, kind: input, shape index: {}]   ;;  %s352_s21 = inlined_call_operand.vmem [shape: bf16[8,8], index: 21, kind: input, shape index: {}]   ;;  %s353_s22 = inlined_call_operand.vmem [shape: bf16[4,8], index: 22, kind: input, shape index: {}]   ;;  %s354_s23 = inlined_call_operand.vmem [shape: f32[1,32], index: 23, kind: input, shape index: {}]   ;;  %s355_s24 = inlined_call_operand.vmem [shape: f32[8,4], index: 24, kind: input, shape index: {}]   ;;  %s356_s1 = inlined_call_operand.vmem [shape: f32[8,8], index: 1, kind: input, shape index: {}]   ;;  %s357_s25 = inlined_call_operand.vmem [shape: f32[1,4], index: 25, kind: input, shape index: {}]   ;;  %s358_s26 = inlined_call_operand.vmem [shape: f32[8,4], index: 26, kind: output, shape index: {}]  }
   0x1   :  { %176 = vmatprep.subr.mxu0 %v183_v0  ;;  %v84_v1 = vld [vmem:[%s355_s24] sm:$0xff]  ;;  %178 = vmatprep.mubr.msk.f32.mxu0 %vm184_vm1, %v183_v0 }
   0x2   :  { %v83_v2 = vld [vmem:[%s356_s1] sm:$0xff]  ;;  %177 = vmatpush3.msra.mxu0 %v84_v1 }
   0x3   :  { %179 = vmatmul.mubr.msk.f32.vlgmr.msra.gmra.mrb[0].mxu0 %vm92_vm0, %v83_v2  ;;  %v172_v3 = vld [vmem:[%s357_s25] ss:$0 sm:$0xff] }
  0xd6   :  { %v162_v4 = vpop.f32.mrb[0].mxu0 }
  0xd7   :  { %v163_v5 = vadd.f32 %v172_v3, %v162_v4  ;;  %v180_v6 = vpop.f32.mrb[1].mxu0 }
  0xd9   :  { %167 = vst.msk [vmem:[%s358_s26] sm:$0xff] %vm166_vm2, %v163_v5 }

</bundles_post_ra>
